<compile_context>
chip_gen: v7x
topology: tpu7x:2x2x1
jax: 0.10.0
libtpu: 0.0.40
codegen_flags: <defaults>
</compile_context>

<pallas_src>
import functools

import jax
import jax.numpy as jnp
from jax import lax
from jax.experimental import pallas as pl
from jax.experimental.pallas import tpu as pltpu


_LANE = 128
_TARGET_BLOCK_BYTES = 2 * 1024 * 1024      # ~2 MiB of real data per input block
_VMEM_INPUT_BUDGET = 12 * 1024 * 1024      # 2 inputs x 2 pipeline buffers
_VMEM_LIMIT_BYTES = 32 * 1024 * 1024       # <= v7x 64 MiB physical, safe everywhere


def _round_up(x, m):
    return ((x + m - 1) // m) * m


def _default_n_par():
    """Sample-axis split only pays off on multi-TensorCore parts."""
    try:
        kind = jax.devices()[0].device_kind.lower()
    except Exception:
        return 1
    return 2 if any(tag in kind for tag in ("v7", "v4", "v5p")) else 1


def _choose_rows_per_tile(n_rows, itemsize, override=None):
    """Rows (of 128 lanes) per grid step; multiple of 32, ~2 MiB per block."""
    if override is not None:
        r = max(32, _round_up(int(override), 32))
    else:
        r = max(32, _TARGET_BLOCK_BYTES // (_LANE * itemsize))
        r = min(r, _VMEM_INPUT_BUDGET // (4 * _LANE * itemsize))
    r = min(r, _round_up(max(n_rows, 1), 32))
    return _round_up(r, 32)


# ----------------------------------------------------------------------------
# Pallas kernel: accumulate the 5 moments as dense (8,128) partials into a
# resident (1, 5, 8, 128) output block.
# ----------------------------------------------------------------------------
def _moments_kernel(p_ref, t_ref, out_ref, *, rows_per_tile, valid_rows,
                    tiles_per_group, split_groups, may_mask):
    k = pl.program_id(1)

    @pl.when(k == 0)
    def _init():
        out_ref[...] = jnp.zeros_like(out_ref)

    p = p_ref[...].reshape(-1, _LANE).astype(jnp.float32)
    t = t_ref[...].reshape(-1, _LANE).astype(jnp.float32)
    row_groups = rows_per_tile // 8

    def _accum(pv, tv):
        def red(x):
            # (R,128) -> (R/8, 8, 128) matches the native vreg tiling: the
            # partial reduce is pure VALU adds, accumulation is a dense
            # (8,128) store (no XLU relayout, no masked partial stores).
            return jnp.sum(x.reshape(row_groups, 8, _LANE), axis=0)
        out_ref[0, 0] += red(pv)
        out_ref[0, 1] += red(tv)
        out_ref[0, 2] += red(pv * pv)
        out_ref[0, 3] += red(tv * tv)
        out_ref[0, 4] += red(pv * tv)

    if not may_mask:
        _accum(p, t)
        return

    # Tail / phantom handling. NOTE: the mask uses the UNclamped tile index so
    # clamped phantom tiles (index_map re-DMAs the last real tile) contribute
    # exactly zero; the mask is only applied on tiles that need it.
    if split_groups:
        tile = pl.program_id(0) * tiles_per_group + k
    else:
        tile = k
    needs_mask = (tile + 1) * rows_per_tile > valid_rows

    @pl.when(needs_mask)
    def _masked():
        ridx = lax.broadcasted_iota(jnp.int32, (rows_per_tile, _LANE), 0)
        valid = (ridx + tile * rows_per_tile) < valid_rows
        _accum(jnp.where(valid, p, 0.0), jnp.where(valid, t, 0.0))

    @pl.when(jnp.logical_not(needs_mask))
    def _dense():
        _accum(p, t)


# ----------------------------------------------------------------------------
# Wrappers: lane-dense re-layout + pallas_call + tiny channel-grouping glue.
# ----------------------------------------------------------------------------
def _moments_flat(preds, targets, *, rows_per_tile=None, n_par=None):
    """(S, C) inputs, channels interleaved along lanes (128 % C == 0)."""
    S, C = preds.shape
    itemsize = jnp.dtype(preds.dtype).itemsize
    total = S * C
    pad = (-total) % _LANE

    p = preds.reshape(-1)
    t = targets.reshape(-1)
    if pad:
        # TODO(synk): this pad costs one extra HBM copy; it only triggers when
        # S*C is not a multiple of 128 (the zeros do not bias the sums).
        p = jnp.pad(p, (0, pad))
        t = jnp.pad(t, (0, pad))
    n_rows = (total + pad) // _LANE
    p = p.reshape(n_rows, _LANE)
    t = t.reshape(n_rows, _LANE)

    R = _choose_rows_per_tile(n_rows, itemsize, rows_per_tile)
    total_tiles = pl.cdiv(n_rows, R)
    n_par = _default_n_par() if n_par is None else int(n_par)
    n_par = max(1, min(n_par, total_tiles))
    tiles_per = pl.cdiv(total_tiles, n_par)
    phantom = n_par * tiles_per > total_tiles
    may_mask = n_par * tiles_per * R != n_rows
    last_tile = total_tiles - 1

    if phantom:
        def in_map(g, k):
            return (jnp.minimum(g * tiles_per + k, last_tile), 0)
    else:
        def in_map(g, k):
            return (g * tiles_per + k, 0)

    kernel = functools.partial(
        _moments_kernel, rows_per_tile=R, valid_rows=n_rows,
        tiles_per_group=tiles_per, split_groups=True, may_mask=may_mask)

    out = pl.pallas_call(
        kernel,
        out_shape=jax.ShapeDtypeStruct((n_par, 5, 8, _LANE), jnp.float32),
        grid=(n_par, tiles_per),
        in_specs=[pl.BlockSpec((R, _LANE), in_map),
                  pl.BlockSpec((R, _LANE), in_map)],
        out_specs=pl.BlockSpec((1, 5, 8, _LANE), lambda g, k: (g, 0, 0, 0)),
        compiler_params=pltpu.CompilerParams(
            dimension_semantics=("parallel", "arbitrary"),
            vmem_limit_bytes=_VMEM_LIMIT_BYTES),
        cost_estimate=pl.CostEstimate(
            flops=8 * total, transcendentals=0,
            bytes_accessed=2 * total * itemsize + n_par * 5 * 8 * _LANE * 4),
    )(p, t)

    lane_sums = jnp.sum(out, axis=(0, 2))                        # (5, 128)
    per_ch = lane_sums.reshape(5, _LANE // C, C).sum(axis=1)     # channel = lane % C
    return per_ch, jnp.float32(S)


def _moments_channels(preds, targets, *, rows_per_tile=None):
    """(C, S) inputs; channel-pure lane-dense rows, grid axis 0 = channel."""
    C, S = preds.shape
    itemsize = jnp.dtype(preds.dtype).itemsize
    pad = (-S) % _LANE
    if pad:
        # TODO(synk): pad costs one extra HBM copy; only when S % 128 != 0.
        preds = jnp.pad(preds, ((0, 0), (0, pad)))
        targets = jnp.pad(targets, ((0, 0), (0, pad)))
    n_rows = (S + pad) // _LANE
    p = preds.reshape(C, n_rows, _LANE)
    t = targets.reshape(C, n_rows, _LANE)

    R = _choose_rows_per_tile(n_rows, itemsize, rows_per_tile)
    tiles = pl.cdiv(n_rows, R)
    may_mask = tiles * R != n_rows

    kernel = functools.partial(
        _moments_kernel, rows_per_tile=R, valid_rows=n_rows,
        tiles_per_group=tiles, split_groups=False, may_mask=may_mask)

    out = pl.pallas_call(
        kernel,
        out_shape=jax.ShapeDtypeStruct((C, 5, 8, _LANE), jnp.float32),
        grid=(C, tiles),
        in_specs=[pl.BlockSpec((1, R, _LANE), lambda c, k: (c, k, 0)),
                  pl.BlockSpec((1, R, _LANE), lambda c, k: (c, k, 0))],
        out_specs=pl.BlockSpec((1, 5, 8, _LANE), lambda c, k: (c, 0, 0, 0)),
        compiler_params=pltpu.CompilerParams(
            dimension_semantics=("parallel", "arbitrary"),
            vmem_limit_bytes=_VMEM_LIMIT_BYTES),
        cost_estimate=pl.CostEstimate(
            flops=8 * C * S, transcendentals=0,
            bytes_accessed=2 * C * S * itemsize + C * 5 * 8 * _LANE * 4),
    )(p, t)

    per_ch = jnp.sum(out, axis=(2, 3)).T                         # (5, C)
    return per_ch, jnp.float32(S)


# ----------------------------------------------------------------------------
# Moment -> statistic glue (plain JAX; scalars / (C,) vectors)
# ----------------------------------------------------------------------------
def _finalize_stats(moments, n, eps):
    # TODO(synk): one-pass moments can lose precision for very long signals with
    # a large DC offset; a two-pass variant costs an extra HBM pass.
    sp, st, spp, stt, spt = moments
    pm, tm = sp / n, st / n
    num = spt - n * pm * tm
    varp = jnp.maximum(spp - n * pm * pm, 0.0)   # clamp cancellation-induced negatives
    vart = jnp.maximum(stt - n * tm * tm, 0.0)
    corr = num / (jnp.sqrt(varp * vart) + eps)
    return corr, spp / n, stt / n                # corr, mean(p^2), mean(t^2) per channel


def _ild_from_mean_sq(ms_left, ms_right, eps=1e-8):
    return 10.0 * jnp.log10((jnp.sqrt(ms_left) + eps) / (jnp.sqrt(ms_right) + eps))


# ----------------------------------------------------------------------------
# CustomLoss wrapper (forward-pass semantics of the PyTorch module)
# ----------------------------------------------------------------------------
def custom_loss(preds, targets, mode="mean", window_pred=False,
                adjust_alpha=False, alpha_start=0.0, alpha_end=1.0,
                total_epoch=20, epoch=0, eps=1e-8,
                rows_per_tile=None, n_par=None):
    """Mirrors CustomLoss.forward for the correlation / ILD modes.

    preds, targets: (S, C) if window_pred=False, (C, S) if window_pred=True.
    """
    if window_pred:
        n_ch = preds.shape[0]
        moments, n = _moments_channels(preds, targets, rows_per_tile=rows_per_tile)
    else:
        n_ch = preds.shape[1]
        if _LANE % n_ch == 0:
            moments, n = _moments_flat(preds, targets,
                                       rows_per_tile=rows_per_tile, n_par=n_par)
        else:
            # TODO(synk): channel counts not dividing 128 fall back to a
            # wrapper-side transpose (one extra HBM pass) + channel-pure kernel.
            moments, n = _moments_channels(preds.T, targets.T,
                                           rows_per_tile=rows_per_tile)

    if adjust_alpha:
        # NOTE: matches the PyTorch module exactly (alpha_start is not an offset).
        alpha = (alpha_end - alpha_start) * epoch / total_epoch
    else:
        alpha = alpha_end

    corr, msp, mst = _finalize_stats(moments, n, eps)

    if mode == "mean":
        return [jnp.mean(-corr)]
    elif mode == "ressamble":
        assert n_ch == 2
        diff = jnp.abs(corr[0] - corr[1])
        corr_loss = jnp.mean(-corr)
        return [corr_loss + alpha * diff, corr, diff]
    elif mode == "ild_mae":
        assert n_ch == 2
        ild_mae = jnp.abs(_ild_from_mean_sq(msp[0], msp[1], eps)
                          - _ild_from_mean_sq(mst[0], mst[1], eps))
        return [ild_mae]
    elif mode == "ild_mse":
        assert n_ch == 2
        ild_mse = (_ild_from_mean_sq(msp[0], msp[1], eps)
                   - _ild_from_mean_sq(mst[0], mst[1], eps)) ** 2
        return [ild_mse]
    elif mode == "corr_ild_mae":
        assert n_ch == 2
        ild_mae = jnp.abs(_ild_from_mean_sq(msp[0], msp[1], eps)
                          - _ild_from_mean_sq(mst[0], mst[1], eps))
        corr_loss = jnp.mean(-corr)
        return [(1 - alpha) * corr_loss + alpha * ild_mae, corr_loss, ild_mae]
    elif mode == "corr_ild_mse":
        assert n_ch == 2
        ild_mse = (_ild_from_mean_sq(msp[0], msp[1], eps)
                   - _ild_from_mean_sq(mst[0], mst[1], eps)) ** 2
        corr_loss = jnp.mean(-corr)
        return [(1 - alpha) * corr_loss + alpha * ild_mse, corr_loss, ild_mse]
    else:
        # TODO(synk): diff_mse / pred_diff_mse / pred_ild_mse / corr_diff_* need
        # cross-channel abs/diff reductions not covered by the moment kernel;
        # corr_ild_mse_penalty(_w) take list targets; spatial_locus is BCE.
        raise ValueError("Introduce a valid loss")


# ----------------------------------------------------------------------------
# Pure-JAX references (mirror the PyTorch math) for correctness checks.
# ----------------------------------------------------------------------------
def _ref_correlation(p_cs, t_cs, eps=1e-8):   # (C, S)
    pm = p_cs.mean(axis=1, keepdims=True)
    tm = t_cs.mean(axis=1, keepdims=True)
    pd, td = p_cs - pm, t_cs - tm
    num = (pd * td).sum(axis=1)
    den = jnp.sqrt((pd ** 2).sum(axis=1) * (td ** 2).sum(axis=1)) + eps
    return num / den


def _ref_ild(left, right, eps=1e-8):
    return 10.0 * jnp.log10((jnp.sqrt(jnp.mean(left ** 2)) + eps)
                            / (jnp.sqrt(jnp.mean(right ** 2)) + eps))


if __name__ == "__main__":
    key = jax.random.PRNGKey(0)
    k1, k2 = jax.random.split(key)

    S, C = 1000, 2                           # (samples, channels), window_pred=False
    preds_sc = jax.random.normal(k1, (S, C), dtype=jnp.float32)
    targets_sc = 0.7 * preds_sc + 0.3 * jax.random.normal(k2, (S, C), dtype=jnp.float32)
    preds_cs, targets_cs = preds_sc.T, targets_sc.T

    ref_corr = _ref_correlation(preds_cs, targets_cs)
    ref_loss_mean = jnp.mean(-ref_corr)
    ref_ild_p = _ref_ild(preds_cs[0], preds_cs[1])
    ref_ild_t = _ref_ild(targets_cs[0], targets_cs[1])
    ref_ild_mae = jnp.abs(ref_ild_p - ref_ild_t)

    # 1) window_pred=False flat lane-dense path (2000 -> 2048 pad, masked tail).
    (loss_mean,) = custom_loss(preds_sc, targets_sc, mode="mean")
    loss_mean = jax.block_until_ready(loss_mean)
    assert jnp.allclose(loss_mean, ref_loss_mean, atol=1e-4, rtol=1e-4)

    loss_r, corr_r, diff_r = custom_loss(preds_sc, targets_sc, mode="ressamble")
    jax.block_until_ready(loss_r)
    assert jnp.allclose(corr_r, ref_corr, atol=1e-4, rtol=1e-4)
    assert jnp.allclose(diff_r, jnp.abs(ref_corr[0] - ref_corr[1]), atol=1e-4, rtol=1e-4)

    # 2) Multi-tile + forced 2-way split + phantom tile + masked tail:
    #    12288*2/128 = 192 rows; rows_per_tile=64 -> 3 tiles; n_par=2 -> 1 phantom.
    S2 = 12288
    k3, k4 = jax.random.split(jax.random.PRNGKey(1))
    p2_sc = jax.random.normal(k3, (S2, 2), dtype=jnp.float32)
    t2_sc = 0.5 * p2_sc + 0.5 * jax.random.normal(k4, (S2, 2), dtype=jnp.float32)
    ref2_corr = _ref_correlation(p2_sc.T, t2_sc.T)
    ref2_loss = jnp.mean(-ref2_corr)
    ref2_ild_mse = (_ref_ild(p2_sc.T[0], p2_sc.T[1]) - _ref_ild(t2_sc.T[0], t2_sc.T[1])) ** 2
    alpha = 1.0 * 5 / 20
    ref2_ci = (1 - alpha) * ref2_loss + alpha * ref2_ild_mse

    loss_ci, corr_loss_ci, ild_mse_ci = custom_loss(
        p2_sc, t2_sc, mode="corr_ild_mse", adjust_alpha=True,
        alpha_start=0.0, alpha_end=1.0, total_epoch=20, epoch=5,
        rows_per_tile=64, n_par=2)
    jax.block_until_ready(loss_ci)
    assert jnp.allclose(loss_ci, ref2_ci, atol=1e-4, rtol=1e-4)
    assert jnp.allclose(ild_mse_ci, ref2_ild_mse, atol=1e-4, rtol=1e-4)

    # 3) window_pred=True channel-pure lane-dense path (S padded 1000 -> 1024).
    (loss_mean_cs,) = custom_loss(preds_cs, targets_cs, mode="mean", window_pred=True)
    jax.block_until_ready(loss_mean_cs)
    assert jnp.allclose(loss_mean_cs, ref_loss_mean, atol=1e-4, rtol=1e-4)

    (ild_mae_out,) = custom_loss(preds_cs, targets_cs, mode="ild_mae", window_pred=True)
    jax.block_until_ready(ild_mae_out)
    assert jnp.allclose(ild_mae_out, ref_ild_mae, atol=1e-4, rtol=1e-4)

    # 4) bf16 inputs (half the HBM traffic; f32 in-kernel accumulation).
    (loss_bf,) = custom_loss(preds_sc.astype(jnp.bfloat16),
                             targets_sc.astype(jnp.bfloat16), mode="mean")
    loss_bf = jax.block_until_ready(loss_bf)
    assert jnp.isfinite(loss_bf)
    assert jnp.allclose(loss_bf, ref_loss_mean, atol=5e-2, rtol=5e-2)

    print("KERNEL_OK")
</pallas_src>

<mosaic_0001>
module attributes {stable_mosaic.version = 11 : i64} {
  func.func @_moments_kernel(%arg0: i32, %arg1: i32, %arg2: memref<32x128xf32, #tpu.memory_space<vmem>>, %arg3: memref<32x128xf32, #tpu.memory_space<vmem>>, %arg4: memref<1x5x8x128xf32, #tpu.memory_space<vmem>>) attributes {dimension_semantics = [#tpu.dimension_semantics<parallel>, #tpu.dimension_semantics<arbitrary>], iteration_bounds = array<i64: 1, 1>, scalar_prefetch = 0 : i64, scratch_operands = 0 : i64, tpu.core_type = #tpu.core_type<tc>, window_params = [{transform_indices = @transform_0, window_bounds = array<i64: 32, 128>}, {transform_indices = @transform_1, window_bounds = array<i64: 32, 128>}, {transform_indices = @transform_2, window_bounds = array<i64: 1, 5, 8, 128>}]} {
    %c0_i32 = arith.constant 0 : i32
    %0 = arith.cmpi eq, %arg1, %c0_i32 : i32
    %1 = arith.extui %0 : i1 to i32
    %c0_i32_0 = arith.constant 0 : i32
    %2 = arith.cmpi ne, %1, %c0_i32_0 : i32
    scf.if %2 {
      %cst = arith.constant 0.000000e+00 : f32
      %15 = vector.broadcast %cst : f32 to vector<1x5x8x128xf32>
      %c0_7 = arith.constant 0 : index
      %c0_8 = arith.constant 0 : index
      %c0_9 = arith.constant 0 : index
      %c0_10 = arith.constant 0 : index
      %16 = vector.load %arg4[%c0_7, %c0_8, %c0_9, %c0_10] : memref<1x5x8x128xf32, #tpu.memory_space<vmem>>, vector<1x5x8x128xf32>
      tpu.vector_store %arg4[%c0_7, %c0_8, %c0_9, %c0_10], %15 {strides = array<i32>} : memref<1x5x8x128xf32, #tpu.memory_space<vmem>>, vector<1x5x8x128xf32>,
    } else {
    }
    %c0 = arith.constant 0 : index
    %c0_1 = arith.constant 0 : index
    %3 = vector.load %arg2[%c0, %c0_1] : memref<32x128xf32, #tpu.memory_space<vmem>>, vector<32x128xf32>
    %c0_2 = arith.constant 0 : index
    %c0_3 = arith.constant 0 : index
    %4 = vector.load %arg3[%c0_2, %c0_3] : memref<32x128xf32, #tpu.memory_space<vmem>>, vector<32x128xf32>
    %c1_i32 = arith.constant 1 : i32
    %5 = arith.muli %arg0, %c1_i32 : i32
    %6 = arith.addi %5, %arg1 : i32
    %c1_i32_4 = arith.constant 1 : i32
    %7 = arith.addi %6, %c1_i32_4 : i32
    %c32_i32 = arith.constant 32 : i32
    %8 = arith.muli %7, %c32_i32 : i32
    %c16_i32 = arith.constant 16 : i32
    %9 = arith.cmpi sgt, %8, %c16_i32 : i32
    %10 = arith.extui %9 : i1 to i32
    %c0_i32_5 = arith.constant 0 : i32
    %11 = arith.cmpi ne, %10, %c0_i32_5 : i32
    scf.if %11 {
      %15 = tpu.iota {dimensions = array<i32: 0>} : vector<32x128xi32>
      %c32_i32_7 = arith.constant 32 : i32
      %16 = arith.muli %6, %c32_i32_7 : i32
      %17 = vector.broadcast %16 : i32 to vector<32x128xi32>
      %18 = arith.addi %15, %17 : vector<32x128xi32>
      %c16_i32_8 = arith.constant 16 : i32
      %19 = vector.broadcast %c16_i32_8 : i32 to vector<32x128xi32>
      %20 = arith.cmpi slt, %18, %19 : vector<32x128xi32>
      %cst = arith.constant 0.000000e+00 : f32
      %21 = vector.broadcast %cst : f32 to vector<32x128xf32>
      %22 = arith.select %20, %3, %21 : vector<32x128xi1>, vector<32x128xf32>
      %cst_9 = arith.constant 0.000000e+00 : f32
      %23 = vector.broadcast %cst_9 : f32 to vector<32x128xf32>
      %24 = arith.select %20, %4, %23 : vector<32x128xi1>, vector<32x128xf32>
      %c0_10 = arith.constant 0 : index
      %c0_11 = arith.constant 0 : index
      %c0_12 = arith.constant 0 : index
      %c0_13 = arith.constant 0 : index
      %25 = vector.load %arg4[%c0_10, %c0_11, %c0_12, %c0_13] : memref<1x5x8x128xf32, #tpu.memory_space<vmem>>, vector<1x1x8x128xf32>
      %26 = vector.shape_cast %25 : vector<1x1x8x128xf32> to vector<8x128xf32>
      %27 = vector.shape_cast %22 : vector<32x128xf32> to vector<4x8x128xf32>
      %cst_14 = arith.constant dense<0.000000e+00> : vector<8x128xf32>
      %28 = vector.multi_reduction <add>, %27, %cst_14 [0] : vector<4x8x128xf32> to vector<8x128xf32>
      %29 = arith.addf %26, %28 : vector<8x128xf32>
      %c0_15 = arith.constant 0 : index
      %c0_16 = arith.constant 0 : index
      %c0_17 = arith.constant 0 : index
      %c0_18 = arith.constant 0 : index
      %30 = vector.load %arg4[%c0_15, %c0_16, %c0_17, %c0_18] : memref<1x5x8x128xf32, #tpu.memory_space<vmem>>, vector<1x1x8x128xf32>
      %31 = vector.shape_cast %30 : vector<1x1x8x128xf32> to vector<8x128xf32>
      %32 = vector.shape_cast %29 : vector<8x128xf32> to vector<1x1x8x128xf32>
      tpu.vector_store %arg4[%c0_15, %c0_16, %c0_17, %c0_18], %32 {strides = array<i32>} : memref<1x5x8x128xf32, #tpu.memory_space<vmem>>, vector<1x1x8x128xf32>,
      %c0_19 = arith.constant 0 : index
      %c1 = arith.constant 1 : index
      %c0_20 = arith.constant 0 : index
      %c0_21 = arith.constant 0 : index
      %33 = vector.load %arg4[%c0_19, %c1, %c0_20, %c0_21] : memref<1x5x8x128xf32, #tpu.memory_space<vmem>>, vector<1x1x8x128xf32>
      %34 = vector.shape_cast %33 : vector<1x1x8x128xf32> to vector<8x128xf32>
      %35 = vector.shape_cast %24 : vector<32x128xf32> to vector<4x8x128xf32>
      %cst_22 = arith.constant dense<0.000000e+00> : vector<8x128xf32>
      %36 = vector.multi_reduction <add>, %35, %cst_22 [0] : vector<4x8x128xf32> to vector<8x128xf32>
      %37 = arith.addf %34, %36 : vector<8x128xf32>
      %c0_23 = arith.constant 0 : index
      %c1_24 = arith.constant 1 : index
      %c0_25 = arith.constant 0 : index
      %c0_26 = arith.constant 0 : index
      %38 = vector.load %arg4[%c0_23, %c1_24, %c0_25, %c0_26] : memref<1x5x8x128xf32, #tpu.memory_space<vmem>>, vector<1x1x8x128xf32>
      %39 = vector.shape_cast %38 : vector<1x1x8x128xf32> to vector<8x128xf32>
      %40 = vector.shape_cast %37 : vector<8x128xf32> to vector<1x1x8x128xf32>
      tpu.vector_store %arg4[%c0_23, %c1_24, %c0_25, %c0_26], %40 {strides = array<i32>} : memref<1x5x8x128xf32, #tpu.memory_space<vmem>>, vector<1x1x8x128xf32>,
      %c0_27 = arith.constant 0 : index
      %c2 = arith.constant 2 : index
      %c0_28 = arith.constant 0 : index
      %c0_29 = arith.constant 0 : index
      %41 = vector.load %arg4[%c0_27, %c2, %c0_28, %c0_29] : memref<1x5x8x128xf32, #tpu.memory_space<vmem>>, vector<1x1x8x128xf32>
      %42 = vector.shape_cast %41 : vector<1x1x8x128xf32> to vector<8x128xf32>
      %43 = arith.mulf %22, %22 : vector<32x128xf32>
      %44 = vector.shape_cast %43 : vector<32x128xf32> to vector<4x8x128xf32>
      %cst_30 = arith.constant dense<0.000000e+00> : vector<8x128xf32>
      %45 = vector.multi_reduction <add>, %44, %cst_30 [0] : vector<4x8x128xf32> to vector<8x128xf32>
      %46 = arith.addf %42, %45 : vector<8x128xf32>
      %c0_31 = arith.constant 0 : index
      %c2_32 = arith.constant 2 : index
      %c0_33 = arith.constant 0 : index
      %c0_34 = arith.constant 0 : index
      %47 = vector.load %arg4[%c0_31, %c2_32, %c0_33, %c0_34] : memref<1x5x8x128xf32, #tpu.memory_space<vmem>>, vector<1x1x8x128xf32>
      %48 = vector.shape_cast %47 : vector<1x1x8x128xf32> to vector<8x128xf32>
      %49 = vector.shape_cast %46 : vector<8x128xf32> to vector<1x1x8x128xf32>
      tpu.vector_store %arg4[%c0_31, %c2_32, %c0_33, %c0_34], %49 {strides = array<i32>} : memref<1x5x8x128xf32, #tpu.memory_space<vmem>>, vector<1x1x8x128xf32>,
      %c0_35 = arith.constant 0 : index
      %c3 = arith.constant 3 : index
      %c0_36 = arith.constant 0 : index
      %c0_37 = arith.constant 0 : index
      %50 = vector.load %arg4[%c0_35, %c3, %c0_36, %c0_37] : memref<1x5x8x128xf32, #tpu.memory_space<vmem>>, vector<1x1x8x128xf32>
      %51 = vector.shape_cast %50 : vector<1x1x8x128xf32> to vector<8x128xf32>
      %52 = arith.mulf %24, %24 : vector<32x128xf32>
      %53 = vector.shape_cast %52 : vector<32x128xf32> to vector<4x8x128xf32>
      %cst_38 = arith.constant dense<0.000000e+00> : vector<8x128xf32>
      %54 = vector.multi_reduction <add>, %53, %cst_38 [0] : vector<4x8x128xf32> to vector<8x128xf32>
      %55 = arith.addf %51, %54 : vector<8x128xf32>
      %c0_39 = arith.constant 0 : index
      %c3_40 = arith.constant 3 : index
      %c0_41 = arith.constant 0 : index
      %c0_42 = arith.constant 0 : index
      %56 = vector.load %arg4[%c0_39, %c3_40, %c0_41, %c0_42] : memref<1x5x8x128xf32, #tpu.memory_space<vmem>>, vector<1x1x8x128xf32>
      %57 = vector.shape_cast %56 : vector<1x1x8x128xf32> to vector<8x128xf32>
      %58 = vector.shape_cast %55 : vector<8x128xf32> to vector<1x1x8x128xf32>
      tpu.vector_store %arg4[%c0_39, %c3_40, %c0_41, %c0_42], %58 {strides = array<i32>} : memref<1x5x8x128xf32, #tpu.memory_space<vmem>>, vector<1x1x8x128xf32>,
      %c0_43 = arith.constant 0 : index
      %c4 = arith.constant 4 : index
      %c0_44 = arith.constant 0 : index
      %c0_45 = arith.constant 0 : index
      %59 = vector.load %arg4[%c0_43, %c4, %c0_44, %c0_45] : memref<1x5x8x128xf32, #tpu.memory_space<vmem>>, vector<1x1x8x128xf32>
      %60 = vector.shape_cast %59 : vector<1x1x8x128xf32> to vector<8x128xf32>
      %61 = arith.mulf %22, %24 : vector<32x128xf32>
      %62 = vector.shape_cast %61 : vector<32x128xf32> to vector<4x8x128xf32>
      %cst_46 = arith.constant dense<0.000000e+00> : vector<8x128xf32>
      %63 = vector.multi_reduction <add>, %62, %cst_46 [0] : vector<4x8x128xf32> to vector<8x128xf32>
      %64 = arith.addf %60, %63 : vector<8x128xf32>
      %c0_47 = arith.constant 0 : index
      %c4_48 = arith.constant 4 : index
      %c0_49 = arith.constant 0 : index
      %c0_50 = arith.constant 0 : index
      %65 = vector.load %arg4[%c0_47, %c4_48, %c0_49, %c0_50] : memref<1x5x8x128xf32, #tpu.memory_space<vmem>>, vector<1x1x8x128xf32>
      %66 = vector.shape_cast %65 : vector<1x1x8x128xf32> to vector<8x128xf32>
      %67 = vector.shape_cast %64 : vector<8x128xf32> to vector<1x1x8x128xf32>
      tpu.vector_store %arg4[%c0_47, %c4_48, %c0_49, %c0_50], %67 {strides = array<i32>} : memref<1x5x8x128xf32, #tpu.memory_space<vmem>>, vector<1x1x8x128xf32>,
    } else {
    }
    %true = arith.constant true
    %12 = arith.xori %9, %true : i1
    %13 = arith.extui %12 : i1 to i32
    %c0_i32_6 = arith.constant 0 : i32
    %14 = arith.cmpi ne, %13, %c0_i32_6 : i32
    scf.if %14 {
      %c0_7 = arith.constant 0 : index
      %c0_8 = arith.constant 0 : index
      %c0_9 = arith.constant 0 : index
      %c0_10 = arith.constant 0 : index
      %15 = vector.load %arg4[%c0_7, %c0_8, %c0_9, %c0_10] : memref<1x5x8x128xf32, #tpu.memory_space<vmem>>, vector<1x1x8x128xf32>
      %16 = vector.shape_cast %15 : vector<1x1x8x128xf32> to vector<8x128xf32>
      %17 = vector.shape_cast %3 : vector<32x128xf32> to vector<4x8x128xf32>
      %cst = arith.constant dense<0.000000e+00> : vector<8x128xf32>
      %18 = vector.multi_reduction <add>, %17, %cst [0] : vector<4x8x128xf32> to vector<8x128xf32>
      %19 = arith.addf %16, %18 : vector<8x128xf32>
      %c0_11 = arith.constant 0 : index
      %c0_12 = arith.constant 0 : index
      %c0_13 = arith.constant 0 : index
      %c0_14 = arith.constant 0 : index
      %20 = vector.load %arg4[%c0_11, %c0_12, %c0_13, %c0_14] : memref<1x5x8x128xf32, #tpu.memory_space<vmem>>, vector<1x1x8x128xf32>
      %21 = vector.shape_cast %20 : vector<1x1x8x128xf32> to vector<8x128xf32>
      %22 = vector.shape_cast %19 : vector<8x128xf32> to vector<1x1x8x128xf32>
      tpu.vector_store %arg4[%c0_11, %c0_12, %c0_13, %c0_14], %22 {strides = array<i32>} : memref<1x5x8x128xf32, #tpu.memory_space<vmem>>, vector<1x1x8x128xf32>,
      %c0_15 = arith.constant 0 : index
      %c1 = arith.constant 1 : index
      %c0_16 = arith.constant 0 : index
      %c0_17 = arith.constant 0 : index
      %23 = vector.load %arg4[%c0_15, %c1, %c0_16, %c0_17] : memref<1x5x8x128xf32, #tpu.memory_space<vmem>>, vector<1x1x8x128xf32>
      %24 = vector.shape_cast %23 : vector<1x1x8x128xf32> to vector<8x128xf32>
      %25 = vector.shape_cast %4 : vector<32x128xf32> to vector<4x8x128xf32>
      %cst_18 = arith.constant dense<0.000000e+00> : vector<8x128xf32>
      %26 = vector.multi_reduction <add>, %25, %cst_18 [0] : vector<4x8x128xf32> to vector<8x128xf32>
      %27 = arith.addf %24, %26 : vector<8x128xf32>
      %c0_19 = arith.constant 0 : index
      %c1_20 = arith.constant 1 : index
      %c0_21 = arith.constant 0 : index
      %c0_22 = arith.constant 0 : index
      %28 = vector.load %arg4[%c0_19, %c1_20, %c0_21, %c0_22] : memref<1x5x8x128xf32, #tpu.memory_space<vmem>>, vector<1x1x8x128xf32>
      %29 = vector.shape_cast %28 : vector<1x1x8x128xf32> to vector<8x128xf32>
      %30 = vector.shape_cast %27 : vector<8x128xf32> to vector<1x1x8x128xf32>
      tpu.vector_store %arg4[%c0_19, %c1_20, %c0_21, %c0_22], %30 {strides = array<i32>} : memref<1x5x8x128xf32, #tpu.memory_space<vmem>>, vector<1x1x8x128xf32>,
      %c0_23 = arith.constant 0 : index
      %c2 = arith.constant 2 : index
      %c0_24 = arith.constant 0 : index
      %c0_25 = arith.constant 0 : index
      %31 = vector.load %arg4[%c0_23, %c2, %c0_24, %c0_25] : memref<1x5x8x128xf32, #tpu.memory_space<vmem>>, vector<1x1x8x128xf32>
      %32 = vector.shape_cast %31 : vector<1x1x8x128xf32> to vector<8x128xf32>
      %33 = arith.mulf %3, %3 : vector<32x128xf32>
      %34 = vector.shape_cast %33 : vector<32x128xf32> to vector<4x8x128xf32>
      %cst_26 = arith.constant dense<0.000000e+00> : vector<8x128xf32>
      %35 = vector.multi_reduction <add>, %34, %cst_26 [0] : vector<4x8x128xf32> to vector<8x128xf32>
      %36 = arith.addf %32, %35 : vector<8x128xf32>
      %c0_27 = arith.constant 0 : index
      %c2_28 = arith.constant 2 : index
      %c0_29 = arith.constant 0 : index
      %c0_30 = arith.constant 0 : index
      %37 = vector.load %arg4[%c0_27, %c2_28, %c0_29, %c0_30] : memref<1x5x8x128xf32, #tpu.memory_space<vmem>>, vector<1x1x8x128xf32>
      %38 = vector.shape_cast %37 : vector<1x1x8x128xf32> to vector<8x128xf32>
      %39 = vector.shape_cast %36 : vector<8x128xf32> to vector<1x1x8x128xf32>
      tpu.vector_store %arg4[%c0_27, %c2_28, %c0_29, %c0_30], %39 {strides = array<i32>} : memref<1x5x8x128xf32, #tpu.memory_space<vmem>>, vector<1x1x8x128xf32>,
      %c0_31 = arith.constant 0 : index
      %c3 = arith.constant 3 : index
      %c0_32 = arith.constant 0 : index
      %c0_33 = arith.constant 0 : index
      %40 = vector.load %arg4[%c0_31, %c3, %c0_32, %c0_33] : memref<1x5x8x128xf32, #tpu.memory_space<vmem>>, vector<1x1x8x128xf32>
      %41 = vector.shape_cast %40 : vector<1x1x8x128xf32> to vector<8x128xf32>
      %42 = arith.mulf %4, %4 : vector<32x128xf32>
      %43 = vector.shape_cast %42 : vector<32x128xf32> to vector<4x8x128xf32>
      %cst_34 = arith.constant dense<0.000000e+00> : vector<8x128xf32>
      %44 = vector.multi_reduction <add>, %43, %cst_34 [0] : vector<4x8x128xf32> to vector<8x128xf32>
      %45 = arith.addf %41, %44 : vector<8x128xf32>
      %c0_35 = arith.constant 0 : index
      %c3_36 = arith.constant 3 : index
      %c0_37 = arith.constant 0 : index
      %c0_38 = arith.constant 0 : index
      %46 = vector.load %arg4[%c0_35, %c3_36, %c0_37, %c0_38] : memref<1x5x8x128xf32, #tpu.memory_space<vmem>>, vector<1x1x8x128xf32>
      %47 = vector.shape_cast %46 : vector<1x1x8x128xf32> to vector<8x128xf32>
      %48 = vector.shape_cast %45 : vector<8x128xf32> to vector<1x1x8x128xf32>
      tpu.vector_store %arg4[%c0_35, %c3_36, %c0_37, %c0_38], %48 {strides = array<i32>} : memref<1x5x8x128xf32, #tpu.memory_space<vmem>>, vector<1x1x8x128xf32>,
      %c0_39 = arith.constant 0 : index
      %c4 = arith.constant 4 : index
      %c0_40 = arith.constant 0 : index
      %c0_41 = arith.constant 0 : index
      %49 = vector.load %arg4[%c0_39, %c4, %c0_40, %c0_41] : memref<1x5x8x128xf32, #tpu.memory_space<vmem>>, vector<1x1x8x128xf32>
      %50 = vector.shape_cast %49 : vector<1x1x8x128xf32> to vector<8x128xf32>
      %51 = arith.mulf %3, %4 : vector<32x128xf32>
      %52 = vector.shape_cast %51 : vector<32x128xf32> to vector<4x8x128xf32>
      %cst_42 = arith.constant dense<0.000000e+00> : vector<8x128xf32>
      %53 = vector.multi_reduction <add>, %52, %cst_42 [0] : vector<4x8x128xf32> to vector<8x128xf32>
      %54 = arith.addf %50, %53 : vector<8x128xf32>
      %c0_43 = arith.constant 0 : index
      %c4_44 = arith.constant 4 : index
      %c0_45 = arith.constant 0 : index
      %c0_46 = arith.constant 0 : index
      %55 = vector.load %arg4[%c0_43, %c4_44, %c0_45, %c0_46] : memref<1x5x8x128xf32, #tpu.memory_space<vmem>>, vector<1x1x8x128xf32>
      %56 = vector.shape_cast %55 : vector<1x1x8x128xf32> to vector<8x128xf32>
      %57 = vector.shape_cast %54 : vector<8x128xf32> to vector<1x1x8x128xf32>
      tpu.vector_store %arg4[%c0_43, %c4_44, %c0_45, %c0_46], %57 {strides = array<i32>} : memref<1x5x8x128xf32, #tpu.memory_space<vmem>>, vector<1x1x8x128xf32>,
    } else {
    }
    return
  }
  func.func @transform_0(%arg0: i32, %arg1: i32) -> (i32, i32) {
    %c1_i32 = arith.constant 1 : i32
    %0 = arith.muli %arg0, %c1_i32 : i32
    %1 = arith.addi %0, %arg1 : i32
    %c0_i32 = arith.constant 0 : i32
    %c0_i32_0 = arith.constant 0 : i32
    return %1, %c0_i32 : i32, i32
  }
  func.func @transform_1(%arg0: i32, %arg1: i32) -> (i32, i32) {
    %c1_i32 = arith.constant 1 : i32
    %0 = arith.muli %arg0, %c1_i32 : i32
    %1 = arith.addi %0, %arg1 : i32
    %c0_i32 = arith.constant 0 : i32
    %c0_i32_0 = arith.constant 0 : i32
    return %1, %c0_i32 : i32, i32
  }
  func.func @transform_2(%arg0: i32, %arg1: i32) -> (i32, i32, i32, i32) {
    %c0_i32 = arith.constant 0 : i32
    %c0_i32_0 = arith.constant 0 : i32
    %c0_i32_1 = arith.constant 0 : i32
    %c0_i32_2 = arith.constant 0 : i32
    return %arg0, %c0_i32, %c0_i32_0, %c0_i32_1 : i32, i32, i32, i32
  }
}

</mosaic_0001>

<bundles_post_ra>
// kernel: tpu_custom_call.1
= control target key start
LH: loop header
LB: loop body
LE: loop exit
PB: predicated region body
PF: predicated region fallthrough
CT: control target
= control target key end

     0   :  { %7 = vsyncpa [#allocation3], 0  ;;  %s368_s0 = inlined_call_operand.hbm [shape: f32[16,128], index: 0, kind: input, shape index: {}]   ;;  %s369_s1 = inlined_call_operand.hbm [shape: f32[16,128], index: 1, kind: input, shape index: {}]   ;;  %s370_s2 = inlined_call_operand.hbm [shape: f32[1,5,8,128], index: 2, kind: output, shape index: {}]  }
   0x1   :  { %8 = vsyncpa [#allocation6], 0 }
   0x2   :  { %9 = vsyncpa [#allocation4], 0 }
   0x3   :  { %18 = vsyncadd [#allocation3], 256  ;;  %s303_s9 = smov [#allocation2]   ;;  %s231_s13 = scalar_lea.hbm %s368_s0, 256 }
   0x4   :  { %s23_s10 = sshll.u32 %s303_s9, 4  ;;  %p232_p0 = scmp.ne.s32.totalorder %s368_s0, %s231_s13  ;;  %s24_s10 = int_to_ptr.vmem [resolvable:$true] %s23_s10 }
   0x5   :  { %p235_p1 = scmp.lt.u32.totalorder %s231_s13, %s368_s0 }
   0x7   :  { %p237_p2 = pnand %p235_p1, %p232_p0 }
   0x9   :  { %240 = shalt.err (!%p237_p2)
}
   0xa   :  { %s241_s18 = scalar_lea.vmem %s24_s10, 256  ;;  %s245_s19 = scalar_lea.vmem %s24_s10, 512 }
   0xb   :  { %p242_p3 = scmp.ne.s32.totalorder %s24_s10, %s241_s18  ;;  %p246_p4 = scmp.lt.s32.totalorder %s24_s10, %s24_s10 }
   0xc   :  { %p247_p5 = scmp.lt.s32.totalorder %s245_s19, %s241_s18 }
   0xe   :  { %p248_p6 = por %p247_p5, %p246_p4 }
  0x10   :  { %p249_p7 = pnand %p248_p6, %p242_p3 }
  0x12   :  { %252 = shalt.err (!%p249_p7)
}
  0x13   :  { %s304_s20 = smov 128   ;;  %s305_s21 = smov 8  }
  0x14   :  { %29 = dma.hbm_to_vmem [thread:$0]  %s368_s0, 256, %s24_s10, [#allocation3], %s304_s20, %s304_s20, %s305_s21  }
  0x15   :  { %38 = vsyncadd [#allocation6], 256  ;;  %s306_s24 = smov [#allocation5]   ;;  %s253_s28 = scalar_lea.hbm %s369_s1, 256 }
  0x16   :  { %s43_s25 = sshll.u32 %s306_s24, 4  ;;  %p254_p8 = scmp.ne.s32.totalorder %s369_s1, %s253_s28  ;;  %s44_s25 = int_to_ptr.vmem [resolvable:$true] %s43_s25 }
  0x17   :  { %p257_p9 = scmp.lt.u32.totalorder %s253_s28, %s369_s1 }
  0x19   :  { %p259_p10 = pnand %p257_p9, %p254_p8 }
  0x1b   :  { %262 = shalt.err (!%p259_p10)
}
  0x1c   :  { %s263_s5 = scalar_lea.vmem %s44_s25, 256  ;;  %s267_s0 = scalar_lea.vmem %s44_s25, 512 }
  0x1d   :  { %p264_p11 = scmp.ne.s32.totalorder %s44_s25, %s263_s5  ;;  %p268_p12 = scmp.lt.s32.totalorder %s44_s25, %s44_s25 }
  0x1e   :  { %p269_p13 = scmp.lt.s32.totalorder %s267_s0, %s263_s5 }
  0x20   :  { %p270_p0 = por %p269_p13, %p268_p12 }
  0x22   :  { %p271_p1 = pnand %p270_p0, %p264_p11 }
  0x24   :  { %274 = shalt.err (!%p271_p1)
}
  0x25   :  { %49 = dma.hbm_to_vmem [thread:$0]  %s369_s1, 256, %s44_s25, [#allocation6], %s304_s20, %s304_s20, %s305_s21  }
  0x26   :  { %297 = dma.done.wait [#allocation3], 512  }
  0x27   :  { %298 = vsyncadd [#allocation3], 4294966784 }
  0x28   :  { %299 = dma.done.wait [#allocation6], 512  }
  0x29   :  { %300 = vsyncadd [#allocation6], 4294966784  ;;  %v73_v0 = vld [vmem:[#allocation2] sm:$0xff]  ;;  %v74_v1 = vld [vmem:[#allocation2 + $0x8] sm:$0xff]  ;;  %s307_s8 = smov [#allocation7]  }
  0x2a   :  { %v77_v2 = vld [vmem:[#allocation5] sm:$0xff]  ;;  %v112_v3 = vadd.f32 %v74_v1, %v73_v0  ;;  %v78_v4 = vld [vmem:[#allocation5 + $0x8] sm:$0xff]  ;;  %v126_v5 = vmul.f32 %v73_v0, %v73_v0  ;;  %v127_v6 = vmul.f32 %v74_v1, %v74_v1  ;;  %s212_s9 = sshll.u32 %s307_s8, 4  ;;  %s213_s9 = int_to_ptr.vmem [resolvable:$true] %s212_s9 }
  0x2b   :  { %v137_v7 = vmul.f32 %v77_v2, %v77_v2  ;;  %v119_v8 = vadd.f32 %v78_v4, %v77_v2  ;;  %v138_v9 = vmul.f32 %v78_v4, %v78_v4  ;;  %v148_v10 = vmul.f32 %v77_v2, %v73_v0  ;;  %s275_s1 = scalar_lea.vmem %s213_s9, 640  ;;  %p280_p3 = scmp.lt.s32.totalorder %s213_s9, %s213_s9 }
  0x2c   :  { %v149_v11 = vmul.f32 %v78_v4, %v74_v1  ;;  %v130_v12 = vadd.f32 %v127_v6, %v126_v5  ;;  %116 = vst [vmem:[#allocation7] sm:$0xff] %v112_v3  ;;  %p276_p2 = scmp.ne.s32.totalorder %s213_s9, %s275_s1  ;;  %p281_p4 = scmp.lt.s32.totalorder %s275_s1, %s275_s1 }
  0x2d   :  { %v141_v13 = vadd.f32 %v138_v9, %v137_v7  ;;  %123 = vst [vmem:[#allocation7 + $0x8] sm:$0xff] %v119_v8 }
  0x2e   :  { %v152_v14 = vadd.f32 %v149_v11, %v148_v10  ;;  %134 = vst [vmem:[#allocation7 + $0x10] sm:$0xff] %v130_v12  ;;  %p282_p5 = por %p281_p4, %p280_p3 }
  0x2f   :  { %145 = vst [vmem:[#allocation7 + $0x18] sm:$0xff] %v141_v13 }
  0x30   :  { %156 = vst [vmem:[#allocation7 + $0x20] sm:$0xff] %v152_v14  ;;  %p283_p6 = pnand %p282_p5, %p276_p2 }
  0x32   :  { %286 = shalt.err (!%p283_p6)
}
  0x33   :  { %s287_s12 = scalar_lea.hbm %s370_s2, 640 }
  0x34   :  { %p288_p7 = scmp.ne.s32.totalorder %s370_s2, %s287_s12  ;;  %p291_p8 = scmp.lt.u32.totalorder %s287_s12, %s370_s2 }
  0x36   :  { %p293_p9 = pnand %p291_p8, %p288_p7 }
  0x38   :  { %296 = shalt.err (!%p293_p9)
}
  0x39   :  { %218 = dma.vmem_to_hbm [thread:$0]  %s213_s9, 640, %s370_s2, [#allocation4], %s304_s20, %s304_s20, %s305_s21  }
  0x3a   :  { %301 = dma.done.wait [#allocation4], 640  }
  0x3b   :  { %302 = vsyncadd [#allocation4], 4294966656 }
  0x3c   :  { %222 = vsyncpa [#allocation3], 1 }
  0x3d   :  { %223 = vsyncpa [#allocation6], 1 }
  0x3e   :  { %224 = vsyncpa [#allocation4], 1 }

</bundles_post_ra>
